<compile_context>
chip_gen: v7x
topology: tpu7x:2x2x1
jax: 0.10.0
libtpu: 0.0.40
codegen_flags: <defaults>
</compile_context>

<pallas_src>
import functools
import math

import jax
import jax.numpy as jnp
from jax.experimental import pallas as pl
from jax.experimental.pallas import tpu as pltpu


def _attention_group_kernel(x_ref, wq_ref, wk_ref, wv_ref, wo_ref, o_ref,
                            *, n_heads, d_head, scale):
    # x_ref : (P, D)      one (batch, sample) slab
    # wq/wk/wv_ref : (I, D, H)   per-sample weights, pre-transposed
    # wo_ref : (I*H, D)          per-sample output projection, pre-transposed
    # o_ref : (P, D)
    x = x_ref[...].astype(jnp.float32)                       # (P, D)
    p = x.shape[0]
    d = o_ref.shape[-1]

    # Causal mask (equivalent to mask[:P, :P] in the module): keep key <= query.
    q_idx = jax.lax.broadcasted_iota(jnp.int32, (p, p), 0)   # query (row) index
    k_idx = jax.lax.broadcasted_iota(jnp.int32, (p, p), 1)   # key   (col) index
    causal = k_idx <= q_idx

    acc = jnp.zeros((p, d), jnp.float32)
    neg_big = jnp.float32(-1e10)

    # Static loop over heads (n_heads is a small compile-time constant).
    for i in range(n_heads):
        wq_i = wq_ref[i].astype(jnp.float32)                 # (D, H)
        wk_i = wk_ref[i].astype(jnp.float32)                 # (D, H)
        wv_i = wv_ref[i].astype(jnp.float32)                 # (D, H)

        q_i = jnp.dot(x, wq_i, preferred_element_type=jnp.float32)   # (P, H)
        k_i = jnp.dot(x, wk_i, preferred_element_type=jnp.float32)   # (P, H)
        v_i = jnp.dot(x, wv_i, preferred_element_type=jnp.float32)   # (P, H)

        # scores[q, p] = sum_h q_i[q, h] * k_i[p, h]
        scores = jnp.einsum('qh,ph->qp', q_i, k_i,
                            preferred_element_type=jnp.float32)      # (P, P)
        # Mirror torch: tril(scores) - 1e10*(1-mask), then / sqrt(d_head).
        scores = jnp.where(causal, scores, neg_big) * scale

        m = jnp.max(scores, axis=-1, keepdims=True)
        e = jnp.exp(scores - m)
        attn = e / jnp.sum(e, axis=-1, keepdims=True)                # (P, P)

        z_i = jnp.dot(attn, v_i, preferred_element_type=jnp.float32)  # (P, H)

        # W_O columns for this head: f = i*H + h  (head-major flattening).
        wo_i = wo_ref[pl.ds(i * d_head, d_head), :].astype(jnp.float32)  # (H, D)
        acc = acc + jnp.dot(z_i, wo_i, preferred_element_type=jnp.float32)

    o_ref[...] = acc.astype(o_ref.dtype)


def attention_group(x, w_q, w_k, w_v, w_o, *, vmem_limit_bytes=48 * 1024 * 1024):
    """AttentionGroup.forward via a Pallas TPU kernel.

    x   : (B, S, P, D)
    w_q, w_k, w_v : (S, I, H, D)
    w_o : (S, D, I*H)
    returns (B, S, P, D)
    """
    b, s, p, d = x.shape
    s_w, n_heads, d_head, d_w = w_q.shape
    assert s_w == s and d_w == d
    f = n_heads * d_head
    assert w_o.shape == (s, d, f)

    # One-time layout plumbing in plain JAX so every in-kernel contraction is
    # a plain (last-of-LHS x first-of-RHS) matmul.
    wq_t = jnp.transpose(w_q, (0, 1, 3, 2))   # (S, I, D, H)
    wk_t = jnp.transpose(w_k, (0, 1, 3, 2))   # (S, I, D, H)
    wv_t = jnp.transpose(w_v, (0, 1, 3, 2))   # (S, I, D, H)
    wo_t = jnp.transpose(w_o, (0, 2, 1))      # (S, I*H, D)

    kernel = functools.partial(
        _attention_group_kernel,
        n_heads=n_heads,
        d_head=d_head,
        scale=1.0 / math.sqrt(d_head),
    )

    return pl.pallas_call(
        kernel,
        out_shape=jax.ShapeDtypeStruct((b, s, p, d), x.dtype),
        grid_spec=pltpu.PrefetchScalarGridSpec(
            num_scalar_prefetch=0,
            grid=(b, s),
            in_specs=[
                # x: one full (P, D) slab per (batch, sample); D on lanes.
                pl.BlockSpec((None, None, p, d), lambda bi, si: (bi, si, 0, 0)),
                # per-sample weights (all heads resident for the step).
                pl.BlockSpec((None, n_heads, d, d_head),
                             lambda bi, si: (si, 0, 0, 0)),
                pl.BlockSpec((None, n_heads, d, d_head),
                             lambda bi, si: (si, 0, 0, 0)),
                pl.BlockSpec((None, n_heads, d, d_head),
                             lambda bi, si: (si, 0, 0, 0)),
                pl.BlockSpec((None, f, d), lambda bi, si: (si, 0, 0)),
            ],
            out_specs=pl.BlockSpec((None, None, p, d),
                                   lambda bi, si: (bi, si, 0, 0)),
        ),
        compiler_params=pltpu.CompilerParams(
            dimension_semantics=("parallel", "parallel"),
            vmem_limit_bytes=vmem_limit_bytes,
        ),
    )(x, wq_t, wk_t, wv_t, wo_t)


if __name__ == "__main__":
    # Small config consistent with the module.
    batch = 2
    sample_count = 2
    n_heads = 2
    d_head = 8
    d_embed = 32
    n_ctx = 16
    seq = 8           # x.shape[-2] <= n_ctx
    weight_alpha = 0.5

    key = jax.random.PRNGKey(0)
    k_q, k_k, k_v, k_o, k_x = jax.random.split(key, 5)

    w_scale = weight_alpha / math.sqrt(d_embed)
    w_q = w_scale * jax.random.normal(
        k_q, (sample_count, n_heads, d_head, d_embed), dtype=jnp.float32)
    w_k = w_scale * jax.random.normal(
        k_k, (sample_count, n_heads, d_head, d_embed), dtype=jnp.float32)
    w_v = w_scale * jax.random.normal(
        k_v, (sample_count, n_heads, d_head, d_embed), dtype=jnp.float32)
    w_o = w_scale * jax.random.normal(
        k_o, (sample_count, d_embed, n_heads * d_head), dtype=jnp.float32)

    x = jax.random.normal(
        k_x, (batch, sample_count, seq, d_embed), dtype=jnp.float32)

    out = attention_group(x, w_q, w_k, w_v, w_o)
    out = jax.block_until_ready(out)

    # Pure-JAX reference mirroring the torch module exactly.
    def ref_fn(x, w_q, w_k, w_v, w_o):
        k = jnp.einsum('sihd,bspd->bsiph', w_k, x)
        q = jnp.einsum('sihd,bspd->bsiph', w_q, x)
        v = jnp.einsum('sihd,bspd->bsiph', w_v, x)
        scores = jnp.einsum('bsiph,bsiqh->bsiqp', k, q)
        p = x.shape[-2]
        mask2d = jnp.tril(jnp.ones((p, p), jnp.float32))
        masked = scores * mask2d - 1e10 * (1.0 - mask2d)
        attn = jax.nn.softmax(masked / math.sqrt(d_head), axis=-1)
        z = jnp.einsum('bsiph,bsiqp->bsiqh', v, attn)
        bb, ss, ii, qq, hh = z.shape
        z_flat = jnp.transpose(z, (0, 1, 3, 2, 4)).reshape(bb, ss, qq, ii * hh)
        return jnp.einsum('sdf,bsqf->bsqd', w_o, z_flat)

    ref = ref_fn(x, w_q, w_k, w_v, w_o)
    assert out.shape == ref.shape
    max_err = jnp.max(jnp.abs(out - ref))
    assert jnp.allclose(out, ref, atol=5e-3, rtol=5e-3), (
        f"mismatch vs reference, max abs err = {max_err}")

    print("KERNEL_OK")
</pallas_src>

<mosaic_0001>
module attributes {stable_mosaic.version = 11 : i64} {
  func.func @_attention_group_kernel(%arg0: i32, %arg1: i32, %arg2: memref<1x1x8x32xf32, #tpu.memory_space<vmem>>, %arg3: memref<1x2x32x8xf32, #tpu.memory_space<vmem>>, %arg4: memref<1x2x32x8xf32, #tpu.memory_space<vmem>>, %arg5: memref<1x2x32x8xf32, #tpu.memory_space<vmem>>, %arg6: memref<1x16x32xf32, #tpu.memory_space<vmem>>, %arg7: memref<1x1x8x32xf32, #tpu.memory_space<vmem>>) attributes {dimension_semantics = [#tpu.dimension_semantics<parallel>, #tpu.dimension_semantics<parallel>], iteration_bounds = array<i64: 2, 2>, scalar_prefetch = 0 : i64, scratch_operands = 0 : i64, tpu.core_type = #tpu.core_type<tc>, window_params = [{transform_indices = @transform_0, window_bounds = array<i64: 1, 1, 8, 32>}, {transform_indices = @transform_1, window_bounds = array<i64: 1, 2, 32, 8>}, {transform_indices = @transform_2, window_bounds = array<i64: 1, 2, 32, 8>}, {transform_indices = @transform_3, window_bounds = array<i64: 1, 2, 32, 8>}, {transform_indices = @transform_4, window_bounds = array<i64: 1, 16, 32>}, {transform_indices = @transform_5, window_bounds = array<i64: 1, 1, 8, 32>}]} {
    %c0 = arith.constant 0 : index
    %c0_0 = arith.constant 0 : index
    %c0_1 = arith.constant 0 : index
    %c0_2 = arith.constant 0 : index
    %0 = vector.load %arg2[%c0, %c0_0, %c0_1, %c0_2] : memref<1x1x8x32xf32, #tpu.memory_space<vmem>>, vector<1x1x8x32xf32>
    %1 = vector.shape_cast %0 : vector<1x1x8x32xf32> to vector<8x32xf32>
    %2 = tpu.iota {dimensions = array<i32: 0>} : vector<8x8xi32>
    %3 = tpu.iota {dimensions = array<i32: 1>} : vector<8x8xi32>
    %4 = arith.cmpi sle, %3, %2 : vector<8x8xi32>
    %cst = arith.constant 0.000000e+00 : f32
    %5 = vector.broadcast %cst : f32 to vector<8x32xf32>
    %c0_3 = arith.constant 0 : index
    %c0_4 = arith.constant 0 : index
    %c0_5 = arith.constant 0 : index
    %c0_6 = arith.constant 0 : index
    %6 = vector.load %arg3[%c0_3, %c0_4, %c0_5, %c0_6] : memref<1x2x32x8xf32, #tpu.memory_space<vmem>>, vector<1x1x32x8xf32>
    %7 = vector.shape_cast %6 : vector<1x1x32x8xf32> to vector<32x8xf32>
    %c0_7 = arith.constant 0 : index
    %c0_8 = arith.constant 0 : index
    %c0_9 = arith.constant 0 : index
    %c0_10 = arith.constant 0 : index
    %8 = vector.load %arg4[%c0_7, %c0_8, %c0_9, %c0_10] : memref<1x2x32x8xf32, #tpu.memory_space<vmem>>, vector<1x1x32x8xf32>
    %9 = vector.shape_cast %8 : vector<1x1x32x8xf32> to vector<32x8xf32>
    %c0_11 = arith.constant 0 : index
    %c0_12 = arith.constant 0 : index
    %c0_13 = arith.constant 0 : index
    %c0_14 = arith.constant 0 : index
    %10 = vector.load %arg5[%c0_11, %c0_12, %c0_13, %c0_14] : memref<1x2x32x8xf32, #tpu.memory_space<vmem>>, vector<1x1x32x8xf32>
    %11 = vector.shape_cast %10 : vector<1x1x32x8xf32> to vector<32x8xf32>
    %cst_15 = arith.constant dense<0.000000e+00> : vector<8x8xf32>
    %12 = tpu.matmul %1, %7, %cst_15 {dimension_numbers = #tpu.dot_dimension_numbers<[1], [0], [0], [1], [0, 0, 1, 1], [], []>} : vector<8x32xf32>, vector<32x8xf32>, vector<8x8xf32> -> vector<8x8xf32>
    %cst_16 = arith.constant dense<0.000000e+00> : vector<8x8xf32>
    %13 = tpu.matmul %1, %9, %cst_16 {dimension_numbers = #tpu.dot_dimension_numbers<[1], [0], [0], [1], [0, 0, 1, 1], [], []>} : vector<8x32xf32>, vector<32x8xf32>, vector<8x8xf32> -> vector<8x8xf32>
    %cst_17 = arith.constant dense<0.000000e+00> : vector<8x8xf32>
    %14 = tpu.matmul %1, %11, %cst_17 {dimension_numbers = #tpu.dot_dimension_numbers<[1], [0], [0], [1], [0, 0, 1, 1], [], []>} : vector<8x32xf32>, vector<32x8xf32>, vector<8x8xf32> -> vector<8x8xf32>
    "tpu.trace_start"() <{level = 10 : i32, message = "qh,ph->qp"}> : () -> ()
    %cst_18 = arith.constant dense<0.000000e+00> : vector<8x8xf32>
    %15 = tpu.matmul %12, %13, %cst_18 {dimension_numbers = #tpu.dot_dimension_numbers<[1], [1], [0], [0], [0, 0, 1, 0], [], []>} : vector<8x8xf32>, vector<8x8xf32>, vector<8x8xf32> -> vector<8x8xf32>
    %cst_19 = arith.constant -1.000000e+10 : f32
    "tpu.trace_stop"() : () -> ()
    %16 = vector.broadcast %cst_19 : f32 to vector<8x8xf32>
    %17 = arith.select %4, %15, %16 : vector<8x8xi1>, vector<8x8xf32>
    %cst_20 = arith.constant 0.353553385 : f32
    %18 = vector.broadcast %cst_20 : f32 to vector<8x8xf32>
    %19 = arith.mulf %17, %18 : vector<8x8xf32>
    %cst_21 = arith.constant dense<0xFF800000> : vector<8xf32>
    %20 = vector.multi_reduction <maximumf>, %19, %cst_21 [1] : vector<8x8xf32> to vector<8xf32>
    %21 = vector.shape_cast %20 : vector<8xf32> to vector<8x1xf32>
    %22 = vector.broadcast %21 : vector<8x1xf32> to vector<8x8xf32>
    %23 = arith.subf %19, %22 : vector<8x8xf32>
    %24 = math.exp %23 : vector<8x8xf32>
    %cst_22 = arith.constant dense<0.000000e+00> : vector<8xf32>
    %25 = vector.multi_reduction <add>, %24, %cst_22 [1] : vector<8x8xf32> to vector<8xf32>
    %26 = vector.shape_cast %25 : vector<8xf32> to vector<8x1xf32>
    %27 = vector.broadcast %26 : vector<8x1xf32> to vector<8x8xf32>
    %28 = arith.divf %24, %27 : vector<8x8xf32>
    %cst_23 = arith.constant dense<0.000000e+00> : vector<8x8xf32>
    %29 = tpu.matmul %28, %14, %cst_23 {dimension_numbers = #tpu.dot_dimension_numbers<[1], [0], [0], [1], [0, 0, 1, 1], [], []>} : vector<8x8xf32>, vector<8x8xf32>, vector<8x8xf32> -> vector<8x8xf32>
    %c0_24 = arith.constant 0 : index
    %c0_25 = arith.constant 0 : index
    %c0_26 = arith.constant 0 : index
    %30 = vector.load %arg6[%c0_24, %c0_25, %c0_26] : memref<1x16x32xf32, #tpu.memory_space<vmem>>, vector<1x8x32xf32>
    %31 = vector.shape_cast %30 : vector<1x8x32xf32> to vector<8x32xf32>
    %cst_27 = arith.constant dense<0.000000e+00> : vector<8x32xf32>
    %32 = tpu.matmul %29, %31, %cst_27 {dimension_numbers = #tpu.dot_dimension_numbers<[1], [0], [0], [1], [0, 0, 1, 1], [], []>} : vector<8x8xf32>, vector<8x32xf32>, vector<8x32xf32> -> vector<8x32xf32>
    %33 = arith.addf %5, %32 : vector<8x32xf32>
    %c0_28 = arith.constant 0 : index
    %c1 = arith.constant 1 : index
    %c0_29 = arith.constant 0 : index
    %c0_30 = arith.constant 0 : index
    %34 = vector.load %arg3[%c0_28, %c1, %c0_29, %c0_30] : memref<1x2x32x8xf32, #tpu.memory_space<vmem>>, vector<1x1x32x8xf32>
    %35 = vector.shape_cast %34 : vector<1x1x32x8xf32> to vector<32x8xf32>
    %c0_31 = arith.constant 0 : index
    %c1_32 = arith.constant 1 : index
    %c0_33 = arith.constant 0 : index
    %c0_34 = arith.constant 0 : index
    %36 = vector.load %arg4[%c0_31, %c1_32, %c0_33, %c0_34] : memref<1x2x32x8xf32, #tpu.memory_space<vmem>>, vector<1x1x32x8xf32>
    %37 = vector.shape_cast %36 : vector<1x1x32x8xf32> to vector<32x8xf32>
    %c0_35 = arith.constant 0 : index
    %c1_36 = arith.constant 1 : index
    %c0_37 = arith.constant 0 : index
    %c0_38 = arith.constant 0 : index
    %38 = vector.load %arg5[%c0_35, %c1_36, %c0_37, %c0_38] : memref<1x2x32x8xf32, #tpu.memory_space<vmem>>, vector<1x1x32x8xf32>
    %39 = vector.shape_cast %38 : vector<1x1x32x8xf32> to vector<32x8xf32>
    %cst_39 = arith.constant dense<0.000000e+00> : vector<8x8xf32>
    %40 = tpu.matmul %1, %35, %cst_39 {dimension_numbers = #tpu.dot_dimension_numbers<[1], [0], [0], [1], [0, 0, 1, 1], [], []>} : vector<8x32xf32>, vector<32x8xf32>, vector<8x8xf32> -> vector<8x8xf32>
    %cst_40 = arith.constant dense<0.000000e+00> : vector<8x8xf32>
    %41 = tpu.matmul %1, %37, %cst_40 {dimension_numbers = #tpu.dot_dimension_numbers<[1], [0], [0], [1], [0, 0, 1, 1], [], []>} : vector<8x32xf32>, vector<32x8xf32>, vector<8x8xf32> -> vector<8x8xf32>
    %cst_41 = arith.constant dense<0.000000e+00> : vector<8x8xf32>
    %42 = tpu.matmul %1, %39, %cst_41 {dimension_numbers = #tpu.dot_dimension_numbers<[1], [0], [0], [1], [0, 0, 1, 1], [], []>} : vector<8x32xf32>, vector<32x8xf32>, vector<8x8xf32> -> vector<8x8xf32>
    "tpu.trace_start"() <{level = 10 : i32, message = "qh,ph->qp"}> : () -> ()
    %cst_42 = arith.constant dense<0.000000e+00> : vector<8x8xf32>
    %43 = tpu.matmul %40, %41, %cst_42 {dimension_numbers = #tpu.dot_dimension_numbers<[1], [1], [0], [0], [0, 0, 1, 0], [], []>} : vector<8x8xf32>, vector<8x8xf32>, vector<8x8xf32> -> vector<8x8xf32>
    %cst_43 = arith.constant -1.000000e+10 : f32
    "tpu.trace_stop"() : () -> ()
    %44 = vector.broadcast %cst_43 : f32 to vector<8x8xf32>
    %45 = arith.select %4, %43, %44 : vector<8x8xi1>, vector<8x8xf32>
    %cst_44 = arith.constant 0.353553385 : f32
    %46 = vector.broadcast %cst_44 : f32 to vector<8x8xf32>
    %47 = arith.mulf %45, %46 : vector<8x8xf32>
    %cst_45 = arith.constant dense<0xFF800000> : vector<8xf32>
    %48 = vector.multi_reduction <maximumf>, %47, %cst_45 [1] : vector<8x8xf32> to vector<8xf32>
    %49 = vector.shape_cast %48 : vector<8xf32> to vector<8x1xf32>
    %50 = vector.broadcast %49 : vector<8x1xf32> to vector<8x8xf32>
    %51 = arith.subf %47, %50 : vector<8x8xf32>
    %52 = math.exp %51 : vector<8x8xf32>
    %cst_46 = arith.constant dense<0.000000e+00> : vector<8xf32>
    %53 = vector.multi_reduction <add>, %52, %cst_46 [1] : vector<8x8xf32> to vector<8xf32>
    %54 = vector.shape_cast %53 : vector<8xf32> to vector<8x1xf32>
    %55 = vector.broadcast %54 : vector<8x1xf32> to vector<8x8xf32>
    %56 = arith.divf %52, %55 : vector<8x8xf32>
    %cst_47 = arith.constant dense<0.000000e+00> : vector<8x8xf32>
    %57 = tpu.matmul %56, %42, %cst_47 {dimension_numbers = #tpu.dot_dimension_numbers<[1], [0], [0], [1], [0, 0, 1, 1], [], []>} : vector<8x8xf32>, vector<8x8xf32>, vector<8x8xf32> -> vector<8x8xf32>
    %c0_48 = arith.constant 0 : index
    %c8 = arith.constant 8 : index
    %c0_49 = arith.constant 0 : index
    %58 = vector.load %arg6[%c0_48, %c8, %c0_49] : memref<1x16x32xf32, #tpu.memory_space<vmem>>, vector<1x8x32xf32>
    %59 = vector.shape_cast %58 : vector<1x8x32xf32> to vector<8x32xf32>
    %cst_50 = arith.constant dense<0.000000e+00> : vector<8x32xf32>
    %60 = tpu.matmul %57, %59, %cst_50 {dimension_numbers = #tpu.dot_dimension_numbers<[1], [0], [0], [1], [0, 0, 1, 1], [], []>} : vector<8x8xf32>, vector<8x32xf32>, vector<8x32xf32> -> vector<8x32xf32>
    %61 = arith.addf %33, %60 : vector<8x32xf32>
    %c0_51 = arith.constant 0 : index
    %c0_52 = arith.constant 0 : index
    %c0_53 = arith.constant 0 : index
    %c0_54 = arith.constant 0 : index
    %62 = vector.load %arg7[%c0_51, %c0_52, %c0_53, %c0_54] : memref<1x1x8x32xf32, #tpu.memory_space<vmem>>, vector<1x1x8x32xf32>
    %63 = vector.shape_cast %62 : vector<1x1x8x32xf32> to vector<8x32xf32>
    %64 = vector.shape_cast %61 : vector<8x32xf32> to vector<1x1x8x32xf32>
    tpu.vector_store %arg7[%c0_51, %c0_52, %c0_53, %c0_54], %64 {strides = array<i32>} : memref<1x1x8x32xf32, #tpu.memory_space<vmem>>, vector<1x1x8x32xf32>,
    return
  }
  func.func @transform_0(%arg0: i32, %arg1: i32) -> (i32, i32, i32, i32) {
    %c0_i32 = arith.constant 0 : i32
    %c0_i32_0 = arith.constant 0 : i32
    %c0_i32_1 = arith.constant 0 : i32
    return %arg0, %arg1, %c0_i32, %c0_i32_0 : i32, i32, i32, i32
  }
  func.func @transform_1(%arg0: i32, %arg1: i32) -> (i32, i32, i32, i32) {
    %c0_i32 = arith.constant 0 : i32
    %c0_i32_0 = arith.constant 0 : i32
    %c0_i32_1 = arith.constant 0 : i32
    %c0_i32_2 = arith.constant 0 : i32
    return %arg1, %c0_i32, %c0_i32_0, %c0_i32_1 : i32, i32, i32, i32
  }
  func.func @transform_2(%arg0: i32, %arg1: i32) -> (i32, i32, i32, i32) {
    %c0_i32 = arith.constant 0 : i32
    %c0_i32_0 = arith.constant 0 : i32
    %c0_i32_1 = arith.constant 0 : i32
    %c0_i32_2 = arith.constant 0 : i32
    return %arg1, %c0_i32, %c0_i32_0, %c0_i32_1 : i32, i32, i32, i32
  }
  func.func @transform_3(%arg0: i32, %arg1: i32) -> (i32, i32, i32, i32) {
    %c0_i32 = arith.constant 0 : i32
    %c0_i32_0 = arith.constant 0 : i32
    %c0_i32_1 = arith.constant 0 : i32
    %c0_i32_2 = arith.constant 0 : i32
    return %arg1, %c0_i32, %c0_i32_0, %c0_i32_1 : i32, i32, i32, i32
  }
  func.func @transform_4(%arg0: i32, %arg1: i32) -> (i32, i32, i32) {
    %c0_i32 = arith.constant 0 : i32
    %c0_i32_0 = arith.constant 0 : i32
    %c0_i32_1 = arith.constant 0 : i32
    return %arg1, %c0_i32, %c0_i32_0 : i32, i32, i32
  }
  func.func @transform_5(%arg0: i32, %arg1: i32) -> (i32, i32, i32, i32) {
    %c0_i32 = arith.constant 0 : i32
    %c0_i32_0 = arith.constant 0 : i32
    %c0_i32_1 = arith.constant 0 : i32
    return %arg0, %arg1, %c0_i32, %c0_i32_0 : i32, i32, i32, i32
  }
}

</mosaic_0001>

<bundles_post_ra>
// kernel: tpu_custom_call.1
= control target key start
LH: loop header
LB: loop body
LE: loop exit
PB: predicated region body
PF: predicated region fallthrough
CT: control target
= control target key end

     0   :  { %10 = vsyncpa [#allocation3], 0  ;;  %s2113_s0 = inlined_call_operand.vmem [shape: f32[2,2,8,32], index: 0, kind: input, shape index: {}]   ;;  %s2114_s1 = inlined_call_operand.vmem [shape: f32[2,2,32,8], index: 1, kind: input, shape index: {}]   ;;  %s2115_s2 = inlined_call_operand.vmem [shape: f32[2,2,32,8], index: 2, kind: input, shape index: {}]   ;;  %s2116_s3 = inlined_call_operand.vmem [shape: f32[2,2,32,8], index: 3, kind: input, shape index: {}]   ;;  %s2117_s4 = inlined_call_operand.vmem [shape: f32[2,16,32], index: 4, kind: input, shape index: {}]   ;;  %s2118_s5 = inlined_call_operand.hbm [shape: f32[2,2,8,32], index: 5, kind: output, shape index: {}]  }
   0x1   :  { %12 = vsyncpa [#allocation3 + $0x1], 0  ;;  %s1839_s18 = smov 0   ;;  %s1841_s19 = smov 0  }
   0x2   :  { %s1843_s20 = smov 0   ;;  %s1845_s21 = smov 0  }
   0x3   :  { %s1847_s22 = smov 0   ;;  %s1849_s23 = smov 0  }
   0x4   :  { %s1851_s24 = smov 0   ;;  %s1853_s25 = smov 0  }
   0x5 LB: > { %s1401_s26 = sadd.s32 4294967295, %s1803_s25   ;;  %s1402_s27 = sadd.s32 4294967294, %s1803_s25   ;;  %s1803_s25 = sphi %s1853_s25, %s18_s25   ;;  %s1799_s24 = sphi %s1851_s24, %s2127_s24   ;;  %s1795_s23 = sphi %s1849_s23, %s2126_s23   ;;  %s1791_s22 = sphi %s1847_s22, %s2125_s22   ;;  %s1787_s21 = sphi %s1845_s21, %s2124_s21   ;;  %s1783_s20 = sphi %s1843_s20, %s2123_s20   ;;  %s1779_s19 = sphi %s1841_s19, %s2122_s19   ;;  %s1775_s18 = sphi %s1839_s18, %s2121_s18  }
   0x6   : > { %s27_s28 = sadd.s32 1, %s1795_s23  ;;  %s30_s29 = sadd.s32 1, %s1799_s24 }
   0x7   : > { %p28_p0 = scmp.ge.s32.totalorder %s27_s28, 2  ;;  %p181_p1 = scmp.ne.s32.totalorder %s1783_s20, %s1779_s19 }
   0x8   : > { %p182_p2 = scmp.eq.s32.totalorder %s1401_s26, 3  ;;  %p187_p5 = scmp.ne.s32.totalorder %s1779_s19, %s1775_s18 }
   0x9   : > { %s2129_s28 = smov (%p28_p0, %s27_s28), 0  ;;  %s2131_s29 = smov (!%p28_p0, %s30_s29), %s1799_s24 }
   0xa   : > { %s167_s30 = ssub.s32 %s1795_s23, %s2129_s28  ;;  %p1890_p3 = por %p182_p2, %p181_p1 }
   0xb   : > { %p32_p4 = scmp.ge.s32.totalorder %s2131_s29, 2  ;;  %p188_p6 = scmp.eq.s32.totalorder %s1402_s27, 3 }
   0xc   : > { %p1405_p7 = scmp.ge.s32.totalorder %s1803_s25, 1  ;;  %p249_p9 = scmp.lt.s32.totalorder %s1803_s25, 5 }
   0xd   : > { %s2133_s29 = smov (%p32_p4, %s2131_s29), 0  ;;  %p1899_p8 = por %p188_p6, %p187_p5 }
   0xe   : > { %s166_s8 = ssub.s32 %s1799_s24, %s2133_s29  ;;  %s171_s9 = sadd.s32 1, %s1783_s20 }
   0xf   : > { %s168_s10 = sor.u32 %s167_s30, %s166_s8  ;;  %p250_p10 = pnand %p1405_p7, %p249_p9 }
  0x10   : > { %p169_p11 = scmp.eq.s32.totalorder %s168_s10, 0  ;;  %p302_p12 = scmp.lt.s32.totalorder (!%p250_p10), %s1787_s21, 1  ;;  %v1805_v0 = vmov (!%p250_p10), 0.0|0.0   ;;  %vm1806_vm0 = vmmov (!%p250_p10), 0   ;;  %v1807_v1 = vmov (!%p250_p10), 0.0   ;;  %vm346_vm1 = vcmask (!%p250_p10), 261120  }
  0x11   : > { %253 = sbr.rel (%p250_p10) target bundleno = 1974 (0x7b6), region = 40  ;;  %p300_p13 = scmp.lt.s32.totalorder (!%p250_p10), %s1791_s22, 1  ;;  %1596 = vmatprep.subr.bf16.mxu1 (!%p250_p10), %v1805_v0  ;;  %1590 = vmatprep.subr.bf16.mxu0 (!%p250_p10), %v1805_v0  ;;  %vm560_vm2 = vcmask (!%p250_p10), 64512   ;;  %v329_v25 = vlaneseq (!%p250_p10) }
  0x12   : > { %s1908_s11 = scalar_select %p169_p11, %s1783_s20, %s171_s9  }
  0x13   : > { %1513 = vmatprep.mubr.msk.f32.mxu1 (!%p250_p10), %vm1806_vm0, %v1807_v1  ;;  %1502 = vmatprep.mubr.msk.f32.mxu0 (!%p250_p10), %vm1806_vm0, %v1807_v1  ;;  %v1984_v26 = vshrl.u32 (!%p250_p10), %v329_v25, 7  ;;  %v1986_v27 = vand.u32 (!%p250_p10), 127, %v329_v25  ;;  %s1444_s15 = sshll.u32 (!%p250_p10), %s1791_s22, 1 }
  0x14   : > { %s1271_s16 = sadd.s32 (!%p250_p10), %s1787_s21, %s1444_s15 }
  0x15   : > { %vm333_vm3 = vcmp.le.s32.totalorder (!%p250_p10), %v1986_v27, %v1984_v26 }
  0x18   : > { %s1915_s12 = scalar_select %p302_p12, %s1787_s21, 1 }
  0x19   : > { %s301_s13 = scalar_select %p300_p13, %s1791_s22, 1 }
  0x1a   : > { %s1923_s14 = sshll.u32 %s1915_s12, 6 }
  0x1b   : > { %s1929_s17 = scalar_lea.vmem %s2115_s2, %s1923_s14  ;;  %s1937_s30 = scalar_lea.vmem %s2114_s1, %s1923_s14 }
  0x1c   : > { %v338_v2 = vld [vmem:[%s1929_s17] sm:$0xff]  ;;  %v339_v3 = vld [vmem:[%s1929_s17 + $0x8] sm:$0xff]  ;;  %v340_v4 = vld [vmem:[%s1929_s17 + $0x10] sm:$0xff]  ;;  %s1407_s8 = sshll.u32 %s301_s13, 1 }
  0x1d   : > { %v1597_v5 = vpack.c.bf16 %v339_v3, %v338_v2  ;;  %v334_v6 = vld [vmem:[%s1937_s30] sm:$0xff]  ;;  %v335_v7 = vld [vmem:[%s1937_s30 + $0x8] sm:$0xff]  ;;  %v341_v8 = vld [vmem:[%s1929_s17 + $0x18] sm:$0xff]  ;;  %s305_s9 = sadd.s32 %s1407_s8, %s1915_s12  ;;  %s1972_s8 = scalar_lea.vmem %s2116_s3, %s1923_s14 }
  0x1e   : > { %v1591_v9 = vpack.c.bf16 %v335_v7, %v334_v6  ;;  %v336_v10 = vld [vmem:[%s1937_s30 + $0x10] sm:$0xff]  ;;  %v337_v11 = vld [vmem:[%s1937_s30 + $0x18] sm:$0xff]  ;;  %s1408_s10 = sshll.u32 %s305_s9, 3  ;;  %v1600_v12 = vpack.c.bf16 %v341_v8, %v340_v4  ;;  %v342_v19 = vld [vmem:[%s1972_s8] sm:$0xff]  ;;  %s1451_s14 = sshll.u32 %s1915_s12, 4 }
  0x1f   : > { %1598 = vmatpush3.bf16.msra.mxu1 %v1597_v5  ;;  %v1594_v13 = vpack.c.bf16 %v337_v11, %v336_v10  ;;  %s307_s26 = scalar_lea.vmem %s2113_s0, %s1408_s10  ;;  %v343_v20 = vld [vmem:[%s1972_s8 + $0x8] sm:$0xff]  ;;  %v344_v21 = vld [vmem:[%s1972_s8 + $0x10] sm:$0xff]  ;;  %v345_v23 = vld [vmem:[%s1972_s8 + $0x18] sm:$0xff]  ;;  %s2033_s9 = scalar_lea.vmem %s2117_s4, %s1451_s14 }
  0x20   : > { %1592 = vmatpush3.bf16.msra.mxu0 %v1591_v9  ;;  %1599 = vmatprep.subr.bf16.mxu1 %v1805_v0  ;;  %v1951_v14 = vld [vmem:[%s307_s26] sm:$0xff]  ;;  %v1603_v22 = vpack.c.bf16 %v343_v20, %v342_v19  ;;  %v1606_v24 = vpack.c.bf16 %v345_v23, %v344_v21  ;;  %v1424_v41 = vld [vmem:[%s1937_s30 + $0x28] sm:$0xff]  ;;  %v1425_v43 = vld [vmem:[%s1937_s30 + $0x30] sm:$0xff]  ;;  %s297_s12 = sand.u32 1, %s1779_s19   ;;  %s1445_s26 = sshll.u32 %s1271_s16, 7 }
  0x21   : > { %1593 = vmatprep.subr.bf16.mxu0 %v1805_v0  ;;  %v1423_v40 = vld [vmem:[%s1937_s30 + $0x20] sm:$0xff]  ;;  %v1426_v44 = vld [vmem:[%s1937_s30 + $0x38] sm:$0xff]  ;;  %v1432_v47 = vld [vmem:[%s1972_s8 + $0x28] sm:$0xff]  ;;  %s1406_s10 = sshll.u32 %s297_s12, 3  ;;  %s1260_s22 = scalar_lea.sflag [#allocation3], %s297_s12 }
  0x22   : > { %v1609_v42 = vpack.c.bf16 %v1424_v41, %v1423_v40  ;;  %v1612_v45 = vpack.c.bf16 %v1426_v44, %v1425_v43  ;;  %v1431_v46 = vld [vmem:[%s1972_s8 + $0x20] sm:$0xff]  ;;  %v1433_v48 = vld [vmem:[%s1972_s8 + $0x30] sm:$0xff]  ;;  %v1434_v50 = vld [vmem:[%s1972_s8 + $0x38] sm:$0xff]  ;;  %s299_s13 = scalar_lea.vmem [#allocation2], %s1406_s10  ;;  %s1808_s30 = smov [#allocation2]  }
  0x23   : > { %1601 = vmatpush3.bf16.msra.mxu1 %v1600_v12  ;;  %v1621_v49 = vpack.c.bf16 %v1432_v47, %v1431_v46  ;;  %v1624_v51 = vpack.c.bf16 %v1434_v50, %v1433_v48  ;;  %v1427_v53 = vld [vmem:[%s1929_s17 + $0x20] sm:$0xff]  ;;  %v1428_v54 = vld [vmem:[%s1929_s17 + $0x28] sm:$0xff]  ;;  %v1429_v58 = vld [vmem:[%s1929_s17 + $0x30] sm:$0xff]  ;;  %s1275_s27 = sshll.u32 %s299_s13, 4  ;;  %s2061_s27 = int_to_ptr.vmem [resolvable:$true] %s1275_s27 }
  0x24   : > { %1595 = vmatpush3.bf16.msra.mxu0 %v1594_v13  ;;  %1527 = vmatprep.subr.mxu1 %v1807_v1  ;;  %v1615_v56 = vpack.c.bf16 %v1428_v54, %v1427_v53  ;;  %v1430_v59 = vld [vmem:[%s1929_s17 + $0x38] sm:$0xff]  ;;  %v723_v61 = vld [vmem:[%s2033_s9] sm:$0xff]  ;;  %s2059_s17 = scalar_lea.hbm %s2118_s5, %s1445_s26  ;;  %s1709_s21 = scalar_lea.vmem %s2061_s27, 128 }
  0x25   : > { %1602 = vmatprep.subr.bf16.mxu0 %v1805_v0  ;;  %v1618_v60 = vpack.c.bf16 %v1430_v59, %v1429_v58  ;;  %p1710_p0 = scmp.ne.s32.totalorder %s2061_s27, %s1709_s21 }
  0x26   : > { %1514 = vmatmul.mubr.msk.f32.vlgmr.msra.gmra.mrb[0].mxu1 %vm346_vm1, %v1951_v14 }
  0x27   : > { %1503 = vmatmul.mubr.msk.f32.vlgmr.msra.gmra.mrb[0].mxu0 %vm346_vm1, %v1951_v14  ;;  %1529 = vmatprep.mubr.msk.f32.mxu1 %vm1806_vm0, %v1807_v1  ;;  %p1711_p1 = pnand %p1710_p0, %p1890_p3 }
  0x28   : > { %1524 = vmatprep.mubr.msk.f32.mxu0 %vm1806_vm0, %v1807_v1  ;;  %1604 = vmatpush3.bf16.msra.mxu0 %v1603_v22  ;;  %v1111_v22 = vld [vmem:[%s2033_s9 + $0x8] sm:$0xff]  ;;  %s1713_s9 = sshll.u32 %s1808_s30, 4  ;;  %s1714_s9 = int_to_ptr.vmem [resolvable:$false] %s1713_s9 }
  0x29   : > { %1605 = vmatprep.subr.bf16.mxu0 %v1805_v0  ;;  %p1712_p2 = pneg %p1711_p1  ;;  %s1715_s10 = scalar_lea.vmem %s1714_s9, 256 }
  0x2a   : > { %p1716_p4 = scmp.lt.s32.totalorder %s2061_s27, %s1714_s9  ;;  %p1717_p5 = scmp.lt.s32.totalorder %s1715_s10, %s1709_s21 }
  0x2c   : > { %1607 = vmatpush3.bf16.msra.mxu0 %v1606_v24  ;;  %p1718_p6 = por %p1717_p5, %p1716_p4 }
  0x2d   : > { %1608 = vmatprep.subr.bf16.mxu0 %v1805_v0 }
  0x2e   : > { %p1719_p7 = pnand %p1718_p6, %p1712_p2 }
  0x2f   : > { %1525 = vmatmul.mubr.msk.f32.vlgmr.msra.gmra.mrb[2].mxu0 %vm346_vm1, %v1951_v14 }
  0x30   : > { %1545 = vmatprep.mubr.msk.f32.mxu0 %vm1806_vm0, %v1807_v1  ;;  %1610 = vmatpush3.bf16.msra.mxu0 %v1609_v42 }
  0x31   : > { %1611 = vmatprep.subr.bf16.mxu0 %v1805_v0 }
  0x34   : > { %1613 = vmatpush3.bf16.msra.mxu0 %v1612_v45 }
  0x35   : > { %1620 = vmatprep.subr.bf16.mxu0 %v1805_v0 }
  0x37   : > { %1546 = vmatmul.mubr.msk.f32.vlgmr.msra.gmra.mrb[4].mxu0 %vm346_vm1, %v1951_v14 }
  0x38   : > { %1622 = vmatpush3.bf16.msra.mxu0 %v1621_v49  ;;  %1567 = vmatprep.mubr.msk.f32.mxu0 %vm1806_vm0, %v1807_v1 }
  0x39   : > { %1623 = vmatprep.subr.bf16.mxu0 %v1805_v0 }
  0x3c   : > { %1625 = vmatpush3.bf16.msra.mxu0 %v1624_v51 }
  0x3d   : > { %1585 = vmatprep.subr.mxu0 %v1807_v1 }
  0x3f   : > { %1568 = vmatmul.mubr.msk.f32.vlgmr.msra.gmra.mrb[6].mxu0 %vm346_vm1, %v1951_v14 }
  0x40   : > { %1587 = vmatprep.mubr.msk.f32.mxu0 %vm1806_vm0, %v1807_v1  ;;  %1586 = vmatpush3.msra.mxu0 %v723_v61 }
  0xf9   : > { %v486_v15 = vpop.f32.mrb[0].mxu1 }
  0xfa   : > { %v1515_v16 = vpop.f32.mrb[1].mxu1  ;;  %1528 = vmatpush3.xpose.msk.msra.mxu1 %vm560_vm2, %v486_v15  ;;  %v416_v17 = vpop.f32.mrb[0].mxu0 }
  0xfb   : > { %v1504_v18 = vpop.f32.mrb[1].mxu0  ;;  %1532 = vmatprep.subr.mxu1 %v1807_v1 }
  0xfd   : > { %1530 = vmatmul.mubr.msk.f32.vlgmr.msra.gmra.mrb[2].mxu1 %vm560_vm2, %v416_v17 }
  0xfe   : > { %1534 = vmatprep.mubr.msk.f32.mxu1 %vm1806_vm0, %v1807_v1 }
 0x102   : > { %v556_v38 = vpop.f32.mrb[2].mxu0 }
 0x103   : > { %v1526_v39 = vpop.f32.mrb[3].mxu0  ;;  %1533 = vmatpush3.msra.mxu1 %v556_v38 }
 0x104   : > { %1614 = vmatprep.subr.bf16.mxu1 %v1805_v0 }
 0x10a   : > { %v805_v62 = vpop.f32.mrb[4].mxu0 }
 0x10b   : > { %v1547_v63 = vpop.f32.mrb[5].mxu0 }
 0x1d0   : > { %v633_v28 = vpop.f32.mrb[2].mxu1 }
 0x1d1   : > { %v637_v29 = vsel %vm333_vm3, %v633_v28, -1e+10  ;;  %v1531_v30 = vpop.f32.mrb[3].mxu1 }
 0x1d2   : > { %v638_v31 = vmul.f32 0.35355338, %v637_v29 }
 0x1d4   : > { %v639_v32 = vsel %vm560_vm2, %v638_v31, -inf }
 0x1d5   : > { %640 = vmax.xlane.f32.xlu0 %v639_v32 }
 0x262   : > { %v641_v33 = vpop.xlane.xlu0 %640 }
 0x263   : > { %v642_v34 = vsub.f32 %v638_v31, %v641_v33 }
 0x265   : > { %v643_v35 = vmul.f32 1.442695, %v642_v34 }
 0x267   : > { %1701 = vpow2.f32 %v643_v35 }
 0x271   : > { %v1702_v36 = vpop.eup %1701 }
 0x272   : > { %v645_v37 = vsel %vm560_vm2, %v1702_v36, 0.0 }
 0x273   : > { %646 = vadd.xlane.f32.xlu0 %v645_v37 }
 0x300   : > { %v647_v52 = vpop.xlane.xlu0 %646 }
 0x301   : > { %1703 = vrcp.f32 %v647_v52 }
 0x30b   : > { %v1704_v55 = vpop.eup %1703 }
 0x30c   : > { %v649_v57 = vmul.f32 %v1704_v55, %v1702_v36 }
 0x30e   : > { %1535 = vmatmul.mubr.msk.f32.vlgmr.msra.gmra.mrb[4].mxu1 %vm560_vm2, %v649_v57 }
 0x30f   : > { %1616 = vmatpush3.bf16.msra.mxu1 %v1615_v56  ;;  %1556 = vmatprep.mubr.msk.f32.mxu1 %vm1806_vm0, %v1807_v1 }
 0x310   : > { %1617 = vmatprep.subr.bf16.mxu1 %v1805_v0  ;;  %v945_v0 = vpop.f32.mrb[6].mxu0 }
 0x311   : > { %v1569_v2 = vpop.f32.mrb[7].mxu0 }
 0x313   : > { %1619 = vmatpush3.bf16.msra.mxu1 %v1618_v60 }
 0x314   : > { %1570 = vmatprep.subr.mxu1 %v1807_v1 }
 0x316   : > { %1557 = vmatmul.mubr.msk.f32.vlgmr.msra.gmra.mrb[6].mxu1 %vm346_vm1, %v1951_v14 }
 0x317   : > { %1572 = vmatprep.mubr.msk.f32.mxu1 %vm1806_vm0, %v1807_v1 }
 0x3e1   : > { %v719_v3 = vpop.f32.mrb[4].mxu1 }
 0x3e2   : > { %v1536_v4 = vpop.f32.mrb[5].mxu1  ;;  %1588 = vmatmul.mubr.msk.f32.vlgmr.msra.gmra.mrb[8].mxu0 %vm560_vm2, %v719_v3 }
 0x3e9   : > { %v875_v5 = vpop.f32.mrb[6].mxu1 }
 0x3ea   : > { %v1558_v6 = vpop.f32.mrb[7].mxu1  ;;  %1571 = vmatpush3.xpose.msk.msra.mxu1 %vm560_vm2, %v875_v5 }
 0x3eb   : > { %1575 = vmatprep.subr.mxu1 %v1807_v1 }
 0x3ed   : > { %1573 = vmatmul.mubr.msk.f32.vlgmr.msra.gmra.mrb[8].mxu1 %vm560_vm2, %v805_v62 }
 0x3ee   : > { %1576 = vmatpush3.msra.mxu1 %v945_v0  ;;  %1577 = vmatprep.mubr.msk.f32.mxu1 %vm1806_vm0, %v1807_v1 }
 0x3ef   : > { %1580 = vmatprep.subr.mxu1 %v1807_v1 }
 0x4b5   : > { %v1254_v7 = vpop.f32.mrb[8].mxu0 }
 0x4b6   : > { %v1589_v8 = vpop.f32.mrb[9].mxu0 }
 0x4c0   : > { %v1021_v9 = vpop.f32.mrb[8].mxu1 }
 0x4c1   : > { %v1025_v10 = vsel %vm333_vm3, %v1021_v9, -1e+10  ;;  %v1574_v11 = vpop.f32.mrb[9].mxu1 }
 0x4c2   : > { %v1026_v12 = vmul.f32 0.35355338, %v1025_v10 }
 0x4c4   : > { %v1027_v13 = vsel %vm560_vm2, %v1026_v12, -inf }
 0x4c5   : > { %1028 = vmax.xlane.f32.xlu1 %v1027_v13 }
 0x552   : > { %v1029_v14 = vpop.xlane.xlu1 %1028 }
 0x553   : > { %v1030_v15 = vsub.f32 %v1026_v12, %v1029_v14 }
 0x555   : > { %v1031_v16 = vmul.f32 1.442695, %v1030_v15 }
 0x557   : > { %1705 = vpow2.f32 %v1031_v16 }
 0x561   : > { %v1706_v17 = vpop.eup %1705 }
 0x562   : > { %v1033_v18 = vsel %vm560_vm2, %v1706_v17, 0.0 }
 0x563   : > { %1034 = vadd.xlane.f32.xlu1 %v1033_v18 }
 0x5f0   : > { %v1035_v19 = vpop.xlane.xlu1 %1034 }
 0x5f1   : > { %1707 = vrcp.f32 %v1035_v19 }
 0x5fb   : > { %v1708_v20 = vpop.eup %1707 }
 0x5fc   : > { %v1037_v21 = vmul.f32 %v1708_v20, %v1706_v17 }
 0x5fe   : > { %1578 = vmatmul.mubr.msk.f32.vlgmr.msra.gmra.mrb[10].mxu1 %vm560_vm2, %v1037_v21 }
 0x5ff   : > { %1581 = vmatpush3.msra.mxu1 %v1111_v22  ;;  %1582 = vmatprep.mubr.msk.f32.mxu1 %vm1806_vm0, %v1807_v1 }
 0x6d1   : > { %v1107_v23 = vpop.f32.mrb[10].mxu1 }
 0x6d2   : > { %v1579_v24 = vpop.f32.mrb[11].mxu1  ;;  %1583 = vmatmul.mubr.msk.f32.vlgmr.msra.gmra.mrb[12].mxu1 %vm560_vm2, %v1107_v23 }
 0x7a5   : > { %v1181_v25 = vpop.f32.mrb[12].mxu1 }
 0x7a6   : > { %v1255_v26 = vadd.f32 %v1254_v7, %v1181_v25  ;;  %v1584_v27 = vpop.f32.mrb[13].mxu1 }
 0x7a8   : > { %1258 = vst.msk [vmem:[%s299_s13] sm:$0xff] %vm346_vm1, %v1255_v26 }
 0x7a9   : > { %1722 = shalt.err (!%p1719_p7)
}
 0x7aa   : > { %s1723_s12 = scalar_lea.hbm %s2059_s17, 128  ;;  %s1727_s26 = scalar_lea.hbm %s2118_s5, 512 }
 0x7ab   : > { %p1724_p9 = scmp.ne.s32.totalorder %s2059_s17, %s1723_s12  ;;  %p1728_p12 = scmp.lt.u32.totalorder %s2059_s17, %s2118_s5 }
 0x7ac   : > { %p1729_p13 = scmp.lt.u32.totalorder %s1727_s26, %s1723_s12  ;;  %p1731_p1 = scmp.lt.u32.totalorder %s1723_s12, %s2059_s17 }
 0x7ad   : > { %p1725_p10 = pnand %p1724_p9, %p1890_p3 }
 0x7ae   : > { %p1730_p0 = por %p1729_p13, %p1728_p12 }
 0x7af   : > { %p1726_p11 = pneg %p1725_p10 }
 0x7b0   : > { %p1732_p2 = por %p1731_p1, %p1730_p0 }
 0x7b2   : > { %p1733_p4 = pnand %p1732_p2, %p1726_p11 }
 0x7b4   : > { %1736 = shalt.err (!%p1733_p4)
}
 0x7b5   : > { %1627 = dma.vmem_to_hbm [thread:$0]  (%p1890_p3), %s2061_s27, 128, %s2059_s17, %s1260_s22  }
 0x7b6 PF: > { %p1633_p5 = scmp.ge.s32.totalorder %s1803_s25, 2  ;;  %s1287_s14 = sand.u32 1, %s1775_s18  }
 0x7b7   : > { %s1288_s21 = scalar_lea.sflag [#allocation3], %s1287_s14 }
 0x7b8   : > { %p1630_p6 = pnand %p1633_p5, %p1899_p8 }
 0x7ba   : > { %1770 = dma.done.wait (!%p1630_p6), %s1288_s21, 128  }
 0x7bb   : > { %1772 = vsyncadd (!%p1630_p6), %s1288_s21, 4294967168  ;;  %s18_s25 = sadd.s32 1, %s1803_s25   ;;  %s2121_s18 = smov %s1779_s19 }
 0x7bc   : > { %p15_p7 = scmp.ge.s32.totalorder %s18_s25, 6   ;;  %s2122_s19 = smov %s1783_s20 }
 0x7bd   : > { %s2123_s20 = smov %s1908_s11  ;;  %s2124_s21 = smov %s1795_s23 }
 0x7be   : > { %s2125_s22 = smov %s1799_s24  ;;  %s2126_s23 = smov %s2129_s28 }
 0x7bf   : > { %s2127_s24 = smov %s2133_s29  ;;  %17 = sbr.rel (!%p15_p7) target bundleno = 5 (0x5), region = 90 }
 0x7c6   :  { %1293 = vsyncpa [#allocation3], 1 }
 0x7c7   :  { %1295 = vsyncpa [#allocation3 + $0x1], 1 }

</bundles_post_ra>
